<compile_context>
chip_gen: v5e
topology: v5e:2x2
jax: 0.10.0
libtpu: 0.0.40
codegen_flags: <defaults>
</compile_context>

<pallas_src>
import jax
import jax.numpy as jnp
from jax.experimental import pallas as pl
from jax.experimental.pallas import tpu as pltpu


_LANE = 128
_SUBLANE = 8
_MAX_TILE_ROWS = 1024  # 1024 x 128 x 4B = 512 KiB per f32 block


def _binarize_kernel(x_ref, o_ref):
    x = x_ref[...]
    one = jnp.ones((), x.dtype)
    zero = jnp.zeros((), x.dtype)
    y = jnp.where(x > zero, one, zero)
    # Preserve NaN propagation of (sign(x) + 1) // 2 exactly.
    o_ref[...] = jnp.where(jnp.isnan(x), x, y)


def naive_binarizer(x, is_train=False):
    """JAX/Pallas equivalent of NaiveBinarizer.forward(x, is_train)."""
    del is_train  # unused, matches PyTorch module
    orig_shape = x.shape
    orig_dtype = x.dtype

    flat = x.reshape(-1)
    n = flat.shape[0]

    # Pad only to a multiple of the lane width (128). The common conv case
    # (n % 128 == 0) takes the zero-copy path with no pad / no trailing slice.
    n_pad = pl.cdiv(n, _LANE) * _LANE
    padded = n_pad != n
    if padded:
        flat = jnp.pad(flat, (0, n_pad - n))

    rows = n_pad // _LANE
    x2d = flat.reshape(rows, _LANE)

    # Big row tile to amortize per-step overhead; for small inputs shrink the
    # tile to the (8-aligned) row count so we don't DMA a mostly-OOB block.
    tile_rows = min(_MAX_TILE_ROWS, pl.cdiv(rows, _SUBLANE) * _SUBLANE)
    grid = (pl.cdiv(rows, tile_rows),)

    out2d = pl.pallas_call(
        _binarize_kernel,
        out_shape=jax.ShapeDtypeStruct((rows, _LANE), orig_dtype),
        grid=grid,
        in_specs=[pl.BlockSpec((tile_rows, _LANE), lambda i: (i, 0))],
        out_specs=pl.BlockSpec((tile_rows, _LANE), lambda i: (i, 0)),
        compiler_params=pltpu.CompilerParams(
            dimension_semantics=("parallel",)),
    )(x2d)

    out_flat = out2d.reshape(-1)
    if padded:
        out_flat = out_flat[:n]
    return out_flat.reshape(orig_shape)


if __name__ == "__main__":
    key = jax.random.PRNGKey(0)
    # NCHW input, small shape consistent with a conv-style feature map.
    x = jax.random.normal(key, (2, 4, 16, 16), dtype=jnp.float32)

    out = naive_binarizer(x, is_train=False)
    out = jax.block_until_ready(out)

    # Reference check in plain JAX (mirrors the PyTorch expression exactly).
    ref = jnp.floor_divide(jnp.sign(x) + 1.0, 2.0)
    assert out.shape == x.shape
    assert out.dtype == x.dtype
    assert bool(jnp.all(out == ref))

    # Also exercise the padded path (n % 128 != 0) for correctness.
    x_odd = jax.random.normal(jax.random.PRNGKey(1), (3, 5, 7), dtype=jnp.float32)
    out_odd = jax.block_until_ready(naive_binarizer(x_odd))
    ref_odd = jnp.floor_divide(jnp.sign(x_odd) + 1.0, 2.0)
    assert out_odd.shape == x_odd.shape
    assert bool(jnp.all(out_odd == ref_odd))

    print("KERNEL_OK")
</pallas_src>

<mosaic_0001>
module attributes {stable_mosaic.version = 11 : i64} {
  func.func @_binarize_kernel(%arg0: i32, %arg1: memref<16x128xf32, #tpu.memory_space<vmem>>, %arg2: memref<16x128xf32, #tpu.memory_space<vmem>>) attributes {dimension_semantics = [#tpu.dimension_semantics<parallel>], iteration_bounds = array<i64: 1>, scalar_prefetch = 0 : i64, scratch_operands = 0 : i64, tpu.core_type = #tpu.core_type<tc>, window_params = [{transform_indices = @transform_0, window_bounds = array<i64: 16, 128>}, {transform_indices = @transform_1, window_bounds = array<i64: 16, 128>}]} {
    %c0 = arith.constant 0 : index
    %c0_0 = arith.constant 0 : index
    %0 = vector.load %arg1[%c0, %c0_0] : memref<16x128xf32, #tpu.memory_space<vmem>>, vector<16x128xf32>
    %cst = arith.constant 0.000000e+00 : f32
    %1 = vector.broadcast %cst : f32 to vector<16x128xf32>
    %2 = arith.cmpf ogt, %0, %1 : vector<16x128xf32>
    %cst_1 = arith.constant 1.000000e+00 : f32
    %cst_2 = arith.constant 0.000000e+00 : f32
    %3 = vector.broadcast %cst_1 : f32 to vector<16x128xf32>
    %4 = vector.broadcast %cst_2 : f32 to vector<16x128xf32>
    %5 = arith.select %2, %3, %4 : vector<16x128xi1>, vector<16x128xf32>
    %6 = arith.cmpf one, %0, %0 : vector<16x128xf32>
    %7 = arith.select %6, %0, %5 : vector<16x128xi1>, vector<16x128xf32>
    %c0_3 = arith.constant 0 : index
    %c0_4 = arith.constant 0 : index
    %8 = vector.load %arg2[%c0_3, %c0_4] : memref<16x128xf32, #tpu.memory_space<vmem>>, vector<16x128xf32>
    tpu.vector_store %arg2[%c0_3, %c0_4], %7 {strides = array<i32>} : memref<16x128xf32, #tpu.memory_space<vmem>>, vector<16x128xf32>,
    return
  }
  func.func @transform_0(%arg0: i32) -> (i32, i32) {
    %c0_i32 = arith.constant 0 : i32
    %c0_i32_0 = arith.constant 0 : i32
    return %arg0, %c0_i32 : i32, i32
  }
  func.func @transform_1(%arg0: i32) -> (i32, i32) {
    %c0_i32 = arith.constant 0 : i32
    %c0_i32_0 = arith.constant 0 : i32
    return %arg0, %c0_i32 : i32, i32
  }
}

</mosaic_0001>

<bundles_post_ra>
// kernel: tpu_custom_call.1
= control target key start
LH: loop header
LB: loop body
LE: loop exit
PB: predicated region body
PF: predicated region fallthrough
CT: control target
= control target key end

     0   :  { %6 = vsyncpa [#allocation3], 0  ;;  %s134_s0 = inlined_call_operand.hbm [shape: f32[16,128], index: 0, kind: input, shape index: {}]   ;;  %s135_s1 = inlined_call_operand.hbm [shape: f32[16,128], index: 1, kind: output, shape index: {}]  }
   0x1   :  { %7 = vsyncpa [#allocation4], 0  ;;  %s12_s8 = sshll.u32 %s134_s0, 4  ;;  %s113_s9 = smov [#allocation2]   ;;  %s13_s8 = int_to_ptr.hbm [resolvable:$true] %s12_s8 }
   0x2   :  { %s14_s10 = sshll.u32 %s113_s9, 4  ;;  %s114_s11 = smov 128   ;;  %s15_s10 = int_to_ptr.vmem [resolvable:$true] %s14_s10 }
   0x3   :  { %s115_s12 = smov 8  }
   0x4   :  { %20 = dma.hbm_to_vmem [thread:$0]  %s13_s8, 256, %s15_s10, [#allocation3], %s114_s11, %s114_s11, %s115_s12  }
   0x5   :  { %109 = dma.done.wait [#allocation3], 256  }
   0x6   :  { %110 = vsyncadd [#allocation3], 4294967040  ;;  %v25_v0 = vld [vmem:[#allocation2] sm:$0xff]  ;;  %v26_v1 = vld [vmem:[#allocation2 + $0x8] sm:$0xff]  ;;  %s116_s13 = smov [#allocation5]   ;;  %s43_s17 = sshll.u32 %s135_s1, 4  ;;  %s44_s17 = int_to_ptr.hbm [resolvable:$true] %s43_s17 }
   0x7   :  { %s41_s14 = sshll.u32 %s116_s13, 4  ;;  %vm27_vm0 = vcmp.gt.f32.partialorder %v25_v0, 0.0  ;;  %vm31_vm1 = vcmp.ne.f32.partialorder %v25_v0, %v25_v0  ;;  %vm28_vm2 = vcmp.gt.f32.partialorder %v26_v1, 0.0  ;;  %vm32_vm3 = vcmp.ne.f32.partialorder %v26_v1, %v26_v1  ;;  %s42_s14 = int_to_ptr.vmem [resolvable:$true] %s41_s14 }
   0x8   :  { %v117_v2 = vmov 0.0  }
   0x9   :  { %v29_v3 = vsel %vm27_vm0, 1.0, %v117_v2  ;;  %v30_v4 = vsel %vm28_vm2, 1.0, %v117_v2 }
   0xa   :  { %v33_v5 = vsel %vm31_vm1, %v25_v0, %v29_v3  ;;  %v34_v6 = vsel %vm32_vm3, %v26_v1, %v30_v4 }
   0xb   :  { %35 = vst [vmem:[#allocation5] sm:$0xff] %v33_v5 }
   0xc   :  { %36 = vst [vmem:[#allocation5 + $0x8] sm:$0xff] %v34_v6 }
   0xd   :  { %49 = dma.vmem_to_hbm [thread:$0]  %s42_s14, 256, %s44_s17, [#allocation4], %s114_s11, %s114_s11, %s115_s12  }
   0xe   :  { %111 = dma.done.wait [#allocation4], 256  }
   0xf   :  { %112 = vsyncadd [#allocation4], 4294967040 }
  0x10   :  { %54 = vsyncpa [#allocation3], 1 }
  0x11   :  { %55 = vsyncpa [#allocation4], 1 }

</bundles_post_ra>
